<compile_context>
chip_gen: v6e
topology: v6e:2x2x1
jax: 0.10.0
libtpu: 0.0.40
codegen_flags: <defaults>
</compile_context>

<pallas_src>
import functools

import numpy as np
import jax
import jax.numpy as jnp
from jax.experimental import pallas as pl
from jax.experimental.pallas import tpu as pltpu


def _fill_padded_scratch(xpad_ref, x_ref, *, H, WC, pad, C):
    """Zero the (Hp, Wp*C) VMEM scratch and copy the (H, W*C) image into its interior."""
    xpad_ref[...] = jnp.zeros_like(xpad_ref)
    xpad_ref[pl.ds(pad, H), pl.ds(pad * C, WC)] = x_ref[0]


def _conv_rows(xpad_ref, wt_ref, oh0, rows, *, K, C, WoC):
    """Compute `rows` output rows of the depthwise conv (stride 1), f32 (rows, Wo*C)."""
    acc = jnp.zeros((rows, WoC), jnp.float32)
    for kh in range(K):                                   # static unrolled taps
        strip = xpad_ref[pl.ds(oh0 + kh, rows), :]        # (rows, Wp*C) contiguous rows
        for kw in range(K):
            patch = strip[:, kw * C:kw * C + WoC]         # contiguous lane slice
            acc = acc + patch * wt_ref[kh, kw, :]         # (Wo*C,) lane-tiled weights
    return acc


def _stats_kernel(x_ref, wt_ref, stats_ref, xpad_ref, *, H, W, K, C, pad, Ho, WoC, band):
    """Per-image partial channel statistics of the (recomputed) conv output.

    x_ref:     (1, H, W*C)   unpadded lane-packed image
    wt_ref:    (K, K, Wo*C)  lane-tiled depthwise filters
    stats_ref: (1, 2, Wo*C)  [sum over rows, sum of squares over rows] partials
    xpad_ref:  (Hp, Wp*C)    VMEM scratch for the padded image
    """
    _fill_padded_scratch(xpad_ref, x_ref, H=H, WC=W * C, pad=pad, C=C)
    s1 = jnp.zeros((1, WoC), jnp.float32)
    s2 = jnp.zeros((1, WoC), jnp.float32)
    for oh0 in range(0, Ho, band):                        # bounded f32 accumulator
        rows = min(band, Ho - oh0)
        acc = _conv_rows(xpad_ref, wt_ref, oh0, rows, K=K, C=C, WoC=WoC)
        s1 = s1 + jnp.sum(acc, axis=0, keepdims=True)
        s2 = s2 + jnp.sum(acc * acc, axis=0, keepdims=True)
    stats_ref[0, 0, :] = s1[0]
    stats_ref[0, 1, :] = s2[0]


def _conv_bn_relu_kernel(x_ref, wt_ref, scale_ref, shift_ref, out_ref, xpad_ref,
                         *, H, W, K, C, pad, Ho, WoC, band):
    """Fused depthwise conv + affine normalize + ReLU for one image (lane-dense output)."""
    _fill_padded_scratch(xpad_ref, x_ref, H=H, WC=W * C, pad=pad, C=C)
    scale = scale_ref[0]                                  # (Wo*C,)
    shift = shift_ref[0]
    for oh0 in range(0, Ho, band):
        rows = min(band, Ho - oh0)
        acc = _conv_rows(xpad_ref, wt_ref, oh0, rows, K=K, C=C, WoC=WoC)
        y = jnp.maximum(acc * scale + shift, 0.0)
        out_ref[0, pl.ds(oh0, rows), :] = y.astype(out_ref.dtype)


def depthwise_block_forward(x_nchw, weight, gamma, beta, *, stride=1, padding=1, eps=1e-5):
    """Forward of DepthwiseBlock.  x_nchw: (N, C, H, W), weight: (C, 1, K, K)."""
    N, C, H, W = x_nchw.shape
    K = weight.shape[-1]
    if stride != 1:
        # TODO(synk): stride != 1 needs column de-interleaving in the lane-packed layout.
        raise NotImplementedError("Pallas DepthwiseBlock kernel implements stride == 1 only")

    Ho = H + 2 * padding - K + 1
    Wo = W + 2 * padding - K + 1
    Hp, Wp = H + 2 * padding, W + 2 * padding
    WoC = Wo * C

    # Output-row band so the f32 accumulator stays <= ~128 KB (vreg-friendly).
    band = max(1, min(Ho, (128 * 1024) // max(1, WoC * 4)))
    if band >= 8:
        band -= band % 8

    # Layout glue (no HBM pad pass): NCHW -> NHWC -> lane-packed (N, H, W*C).
    xf = jnp.transpose(x_nchw, (0, 2, 3, 1)).reshape(N, H, W * C).astype(jnp.float32)
    # Depthwise filters (C,1,K,K) -> (K,K,C) -> lane-tiled (K,K,Wo*C)  (tiny).
    w_kkc = jnp.transpose(weight[:, 0, :, :], (1, 2, 0)).astype(jnp.float32)
    wt = jnp.tile(w_kkc, (1, 1, Wo))                      # index ow*C + c -> w[.., c]

    cparams = pltpu.CompilerParams(dimension_semantics=("parallel",),
                                   vmem_limit_bytes=32 * 1024 * 1024)

    # Pass 1: stats only (per-image partials -> no carried accumulator -> parallel grid).
    stats = pl.pallas_call(
        functools.partial(_stats_kernel, H=H, W=W, K=K, C=C, pad=padding,
                          Ho=Ho, WoC=WoC, band=band),
        grid=(N,),
        in_specs=[
            pl.BlockSpec((1, H, W * C), lambda n: (n, 0, 0)),
            pl.BlockSpec((K, K, WoC), lambda n: (0, 0, 0)),
        ],
        out_specs=pl.BlockSpec((1, 2, WoC), lambda n: (n, 0, 0)),
        out_shape=jax.ShapeDtypeStruct((N, 2, WoC), jnp.float32),
        scratch_shapes=[pltpu.VMEM((Hp, Wp * C), jnp.float32)],
        compiler_params=cparams,
    )(xf, wt)

    # Glue: reduce partials, fold BatchNorm (training-mode batch stats, biased var)
    # into per-channel scale/shift, then lane-tile them to (1, Wo*C).
    s = stats.reshape(N, 2, Wo, C).sum(axis=(0, 2))       # (2, C)
    count = float(N * Ho * Wo)
    mean = s[0] / count
    var = s[1] / count - mean * mean                      # biased (PyTorch BN training)
    scale_c = gamma.astype(jnp.float32) / jnp.sqrt(var + eps)
    shift_c = beta.astype(jnp.float32) - mean * scale_c
    scale = jnp.tile(scale_c, Wo)[None, :]                # (1, Wo*C)
    shift = jnp.tile(shift_c, Wo)[None, :]

    # Pass 2: fused conv recompute + normalize + ReLU, lane-dense output.
    out_flat = pl.pallas_call(
        functools.partial(_conv_bn_relu_kernel, H=H, W=W, K=K, C=C, pad=padding,
                          Ho=Ho, WoC=WoC, band=band),
        grid=(N,),
        in_specs=[
            pl.BlockSpec((1, H, W * C), lambda n: (n, 0, 0)),
            pl.BlockSpec((K, K, WoC), lambda n: (0, 0, 0)),
            pl.BlockSpec((1, WoC), lambda n: (0, 0)),
            pl.BlockSpec((1, WoC), lambda n: (0, 0)),
        ],
        out_specs=pl.BlockSpec((1, Ho, WoC), lambda n: (n, 0, 0)),
        out_shape=jax.ShapeDtypeStruct((N, Ho, WoC), jnp.float32),
        scratch_shapes=[pltpu.VMEM((Hp, Wp * C), jnp.float32)],
        compiler_params=cparams,
    )(xf, wt, scale, shift)

    out = out_flat.reshape(N, Ho, Wo, C)
    return jnp.transpose(out, (0, 3, 1, 2))               # back to NCHW


def _reference(x_nchw, weight, gamma, beta, *, stride, padding, eps=1e-5):
    """Pure-JAX reference matching PyTorch DepthwiseBlock (fresh module, train mode)."""
    C = x_nchw.shape[1]
    conv = jax.lax.conv_general_dilated(
        x_nchw, weight,
        window_strides=(stride, stride),
        padding=((padding, padding), (padding, padding)),
        dimension_numbers=("NCHW", "OIHW", "NCHW"),
        feature_group_count=C,
    )
    mean = conv.mean(axis=(0, 2, 3), keepdims=True)
    var = conv.var(axis=(0, 2, 3), keepdims=True)         # biased variance
    y = (conv - mean) / jnp.sqrt(var + eps) * gamma.reshape(1, C, 1, 1) + beta.reshape(1, C, 1, 1)
    return jnp.maximum(y, 0.0)


if __name__ == "__main__":
    key = jax.random.PRNGKey(0)
    N, C, H, W = 2, 16, 16, 16
    K, stride, padding = 3, 1, 1

    kx, kw = jax.random.split(key, 2)
    x = jax.random.normal(kx, (N, C, H, W), jnp.float32)

    # Deterministic parameter init (shapes per nn.Conv2d(groups=C, bias=False) + nn.BatchNorm2d):
    bound = 1.0 / float(np.sqrt(K * K))                   # depthwise fan_in = K*K
    weight = jax.random.uniform(kw, (C, 1, K, K), jnp.float32, -bound, bound)
    gamma = jnp.ones((C,), jnp.float32)                   # BatchNorm2d default init
    beta = jnp.zeros((C,), jnp.float32)

    out = depthwise_block_forward(x, weight, gamma, beta, stride=stride, padding=padding)
    out = jax.block_until_ready(out)

    ref = _reference(x, weight, gamma, beta, stride=stride, padding=padding)
    assert out.shape == ref.shape == (N, C, H, W)
    if not np.allclose(np.asarray(out), np.asarray(ref), rtol=1e-4, atol=1e-4):
        raise AssertionError("Pallas output does not match reference")
    print("KERNEL_OK")
</pallas_src>

<mosaic_0001>
module attributes {stable_mosaic.version = 11 : i64} {
  func.func @_stats_kernel(%arg0: i32, %arg1: memref<1x16x256xf32, #tpu.memory_space<vmem>>, %arg2: memref<3x3x256xf32, #tpu.memory_space<vmem>>, %arg3: memref<1x2x256xf32, #tpu.memory_space<vmem>>, %arg4: memref<18x288xf32, #tpu.memory_space<vmem>>) attributes {dimension_semantics = [#tpu.dimension_semantics<parallel>], iteration_bounds = array<i64: 2>, scalar_prefetch = 0 : i64, scratch_operands = 1 : i64, tpu.core_type = #tpu.core_type<tc>, window_params = [{transform_indices = @transform_0, window_bounds = array<i64: 1, 16, 256>}, {pipeline_mode = #tpu.pipeline_mode<synchronous>, transform_indices = @transform_1, window_bounds = array<i64: 3, 3, 256>}, {transform_indices = @transform_2, window_bounds = array<i64: 1, 2, 256>}]} {
    %cst = arith.constant 0.000000e+00 : f32
    %0 = vector.broadcast %cst : f32 to vector<18x288xf32>
    %c0 = arith.constant 0 : index
    %c0_0 = arith.constant 0 : index
    %1 = vector.load %arg4[%c0, %c0_0] : memref<18x288xf32, #tpu.memory_space<vmem>>, vector<18x288xf32>
    tpu.vector_store %arg4[%c0, %c0_0], %0 {strides = array<i32>} : memref<18x288xf32, #tpu.memory_space<vmem>>, vector<18x288xf32>,
    %c0_1 = arith.constant 0 : index
    %c0_2 = arith.constant 0 : index
    %c0_3 = arith.constant 0 : index
    %2 = vector.load %arg1[%c0_1, %c0_2, %c0_3] : memref<1x16x256xf32, #tpu.memory_space<vmem>>, vector<1x16x256xf32>
    %3 = vector.shape_cast %2 : vector<1x16x256xf32> to vector<16x256xf32>
    %c1 = arith.constant 1 : index
    %c16 = arith.constant 16 : index
    %4 = vector.load %arg4[%c1, %c16] : memref<18x288xf32, #tpu.memory_space<vmem>>, vector<16x256xf32>
    tpu.vector_store %arg4[%c1, %c16], %3 {strides = array<i32>} : memref<18x288xf32, #tpu.memory_space<vmem>>, vector<16x256xf32>,
    %cst_4 = arith.constant 0.000000e+00 : f32
    %5 = vector.broadcast %cst_4 : f32 to vector<1x256xf32>
    %cst_5 = arith.constant 0.000000e+00 : f32
    %6 = vector.broadcast %cst_5 : f32 to vector<1x256xf32>
    %cst_6 = arith.constant 0.000000e+00 : f32
    %7 = vector.broadcast %cst_6 : f32 to vector<16x256xf32>
    %c0_7 = arith.constant 0 : index
    %c0_8 = arith.constant 0 : index
    %8 = vector.load %arg4[%c0_7, %c0_8] : memref<18x288xf32, #tpu.memory_space<vmem>>, vector<16x288xf32>
    %9 = vector.extract_strided_slice %8 {offsets = [0, 0], sizes = [16, 256], strides = [1, 1]} : vector<16x288xf32> to vector<16x256xf32>
    %c0_9 = arith.constant 0 : index
    %c0_10 = arith.constant 0 : index
    %c0_11 = arith.constant 0 : index
    %10 = vector.load %arg2[%c0_9, %c0_10, %c0_11] : memref<3x3x256xf32, #tpu.memory_space<vmem>>, vector<1x1x256xf32>
    %11 = vector.shape_cast %10 : vector<1x1x256xf32> to vector<256xf32>
    %12 = vector.shape_cast %11 : vector<256xf32> to vector<1x256xf32>
    %13 = vector.broadcast %12 : vector<1x256xf32> to vector<16x256xf32>
    %14 = arith.mulf %9, %13 : vector<16x256xf32>
    %15 = arith.addf %7, %14 : vector<16x256xf32>
    %16 = vector.extract_strided_slice %8 {offsets = [0, 16], sizes = [16, 256], strides = [1, 1]} : vector<16x288xf32> to vector<16x256xf32>
    %c0_12 = arith.constant 0 : index
    %c1_13 = arith.constant 1 : index
    %c0_14 = arith.constant 0 : index
    %17 = vector.load %arg2[%c0_12, %c1_13, %c0_14] : memref<3x3x256xf32, #tpu.memory_space<vmem>>, vector<1x1x256xf32>
    %18 = vector.shape_cast %17 : vector<1x1x256xf32> to vector<256xf32>
    %19 = vector.shape_cast %18 : vector<256xf32> to vector<1x256xf32>
    %20 = vector.broadcast %19 : vector<1x256xf32> to vector<16x256xf32>
    %21 = arith.mulf %16, %20 : vector<16x256xf32>
    %22 = arith.addf %15, %21 : vector<16x256xf32>
    %23 = vector.extract_strided_slice %8 {offsets = [0, 32], sizes = [16, 256], strides = [1, 1]} : vector<16x288xf32> to vector<16x256xf32>
    %c0_15 = arith.constant 0 : index
    %c2 = arith.constant 2 : index
    %c0_16 = arith.constant 0 : index
    %24 = vector.load %arg2[%c0_15, %c2, %c0_16] : memref<3x3x256xf32, #tpu.memory_space<vmem>>, vector<1x1x256xf32>
    %25 = vector.shape_cast %24 : vector<1x1x256xf32> to vector<256xf32>
    %26 = vector.shape_cast %25 : vector<256xf32> to vector<1x256xf32>
    %27 = vector.broadcast %26 : vector<1x256xf32> to vector<16x256xf32>
    %28 = arith.mulf %23, %27 : vector<16x256xf32>
    %29 = arith.addf %22, %28 : vector<16x256xf32>
    %c1_17 = arith.constant 1 : index
    %c0_18 = arith.constant 0 : index
    %30 = vector.load %arg4[%c1_17, %c0_18] : memref<18x288xf32, #tpu.memory_space<vmem>>, vector<16x288xf32>
    %31 = vector.extract_strided_slice %30 {offsets = [0, 0], sizes = [16, 256], strides = [1, 1]} : vector<16x288xf32> to vector<16x256xf32>
    %c1_19 = arith.constant 1 : index
    %c0_20 = arith.constant 0 : index
    %c0_21 = arith.constant 0 : index
    %32 = vector.load %arg2[%c1_19, %c0_20, %c0_21] : memref<3x3x256xf32, #tpu.memory_space<vmem>>, vector<1x1x256xf32>
    %33 = vector.shape_cast %32 : vector<1x1x256xf32> to vector<256xf32>
    %34 = vector.shape_cast %33 : vector<256xf32> to vector<1x256xf32>
    %35 = vector.broadcast %34 : vector<1x256xf32> to vector<16x256xf32>
    %36 = arith.mulf %31, %35 : vector<16x256xf32>
    %37 = arith.addf %29, %36 : vector<16x256xf32>
    %38 = vector.extract_strided_slice %30 {offsets = [0, 16], sizes = [16, 256], strides = [1, 1]} : vector<16x288xf32> to vector<16x256xf32>
    %c1_22 = arith.constant 1 : index
    %c1_23 = arith.constant 1 : index
    %c0_24 = arith.constant 0 : index
    %39 = vector.load %arg2[%c1_22, %c1_23, %c0_24] : memref<3x3x256xf32, #tpu.memory_space<vmem>>, vector<1x1x256xf32>
    %40 = vector.shape_cast %39 : vector<1x1x256xf32> to vector<256xf32>
    %41 = vector.shape_cast %40 : vector<256xf32> to vector<1x256xf32>
    %42 = vector.broadcast %41 : vector<1x256xf32> to vector<16x256xf32>
    %43 = arith.mulf %38, %42 : vector<16x256xf32>
    %44 = arith.addf %37, %43 : vector<16x256xf32>
    %45 = vector.extract_strided_slice %30 {offsets = [0, 32], sizes = [16, 256], strides = [1, 1]} : vector<16x288xf32> to vector<16x256xf32>
    %c1_25 = arith.constant 1 : index
    %c2_26 = arith.constant 2 : index
    %c0_27 = arith.constant 0 : index
    %46 = vector.load %arg2[%c1_25, %c2_26, %c0_27] : memref<3x3x256xf32, #tpu.memory_space<vmem>>, vector<1x1x256xf32>
    %47 = vector.shape_cast %46 : vector<1x1x256xf32> to vector<256xf32>
    %48 = vector.shape_cast %47 : vector<256xf32> to vector<1x256xf32>
    %49 = vector.broadcast %48 : vector<1x256xf32> to vector<16x256xf32>
    %50 = arith.mulf %45, %49 : vector<16x256xf32>
    %51 = arith.addf %44, %50 : vector<16x256xf32>
    %c2_28 = arith.constant 2 : index
    %c0_29 = arith.constant 0 : index
    %52 = vector.load %arg4[%c2_28, %c0_29] : memref<18x288xf32, #tpu.memory_space<vmem>>, vector<16x288xf32>
    %53 = vector.extract_strided_slice %52 {offsets = [0, 0], sizes = [16, 256], strides = [1, 1]} : vector<16x288xf32> to vector<16x256xf32>
    %c2_30 = arith.constant 2 : index
    %c0_31 = arith.constant 0 : index
    %c0_32 = arith.constant 0 : index
    %54 = vector.load %arg2[%c2_30, %c0_31, %c0_32] : memref<3x3x256xf32, #tpu.memory_space<vmem>>, vector<1x1x256xf32>
    %55 = vector.shape_cast %54 : vector<1x1x256xf32> to vector<256xf32>
    %56 = vector.shape_cast %55 : vector<256xf32> to vector<1x256xf32>
    %57 = vector.broadcast %56 : vector<1x256xf32> to vector<16x256xf32>
    %58 = arith.mulf %53, %57 : vector<16x256xf32>
    %59 = arith.addf %51, %58 : vector<16x256xf32>
    %60 = vector.extract_strided_slice %52 {offsets = [0, 16], sizes = [16, 256], strides = [1, 1]} : vector<16x288xf32> to vector<16x256xf32>
    %c2_33 = arith.constant 2 : index
    %c1_34 = arith.constant 1 : index
    %c0_35 = arith.constant 0 : index
    %61 = vector.load %arg2[%c2_33, %c1_34, %c0_35] : memref<3x3x256xf32, #tpu.memory_space<vmem>>, vector<1x1x256xf32>
    %62 = vector.shape_cast %61 : vector<1x1x256xf32> to vector<256xf32>
    %63 = vector.shape_cast %62 : vector<256xf32> to vector<1x256xf32>
    %64 = vector.broadcast %63 : vector<1x256xf32> to vector<16x256xf32>
    %65 = arith.mulf %60, %64 : vector<16x256xf32>
    %66 = arith.addf %59, %65 : vector<16x256xf32>
    %67 = vector.extract_strided_slice %52 {offsets = [0, 32], sizes = [16, 256], strides = [1, 1]} : vector<16x288xf32> to vector<16x256xf32>
    %c2_36 = arith.constant 2 : index
    %c2_37 = arith.constant 2 : index
    %c0_38 = arith.constant 0 : index
    %68 = vector.load %arg2[%c2_36, %c2_37, %c0_38] : memref<3x3x256xf32, #tpu.memory_space<vmem>>, vector<1x1x256xf32>
    %69 = vector.shape_cast %68 : vector<1x1x256xf32> to vector<256xf32>
    %70 = vector.shape_cast %69 : vector<256xf32> to vector<1x256xf32>
    %71 = vector.broadcast %70 : vector<1x256xf32> to vector<16x256xf32>
    %72 = arith.mulf %67, %71 : vector<16x256xf32>
    %73 = arith.addf %66, %72 : vector<16x256xf32>
    %cst_39 = arith.constant dense<0.000000e+00> : vector<256xf32>
    %74 = vector.multi_reduction <add>, %73, %cst_39 [0] : vector<16x256xf32> to vector<256xf32>
    %75 = vector.shape_cast %74 : vector<256xf32> to vector<1x256xf32>
    %76 = arith.addf %5, %75 : vector<1x256xf32>
    %77 = arith.mulf %73, %73 : vector<16x256xf32>
    %cst_40 = arith.constant dense<0.000000e+00> : vector<256xf32>
    %78 = vector.multi_reduction <add>, %77, %cst_40 [0] : vector<16x256xf32> to vector<256xf32>
    %79 = vector.shape_cast %78 : vector<256xf32> to vector<1x256xf32>
    %80 = arith.addf %6, %79 : vector<1x256xf32>
    %81 = vector.shape_cast %76 : vector<1x256xf32> to vector<256xf32>
    %c0_41 = arith.constant 0 : index
    %c0_42 = arith.constant 0 : index
    %c0_43 = arith.constant 0 : index
    %82 = vector.load %arg3[%c0_41, %c0_42, %c0_43] : memref<1x2x256xf32, #tpu.memory_space<vmem>>, vector<1x1x256xf32>
    %83 = vector.shape_cast %82 : vector<1x1x256xf32> to vector<256xf32>
    %84 = vector.shape_cast %81 : vector<256xf32> to vector<1x1x256xf32>
    tpu.vector_store %arg3[%c0_41, %c0_42, %c0_43], %84 {strides = array<i32>} : memref<1x2x256xf32, #tpu.memory_space<vmem>>, vector<1x1x256xf32>,
    %85 = vector.shape_cast %80 : vector<1x256xf32> to vector<256xf32>
    %c0_44 = arith.constant 0 : index
    %c1_45 = arith.constant 1 : index
    %c0_46 = arith.constant 0 : index
    %86 = vector.load %arg3[%c0_44, %c1_45, %c0_46] : memref<1x2x256xf32, #tpu.memory_space<vmem>>, vector<1x1x256xf32>
    %87 = vector.shape_cast %86 : vector<1x1x256xf32> to vector<256xf32>
    %88 = vector.shape_cast %85 : vector<256xf32> to vector<1x1x256xf32>
    tpu.vector_store %arg3[%c0_44, %c1_45, %c0_46], %88 {strides = array<i32>} : memref<1x2x256xf32, #tpu.memory_space<vmem>>, vector<1x1x256xf32>,
    return
  }
  func.func @transform_0(%arg0: i32) -> (i32, i32, i32) {
    %c0_i32 = arith.constant 0 : i32
    %c0_i32_0 = arith.constant 0 : i32
    %c0_i32_1 = arith.constant 0 : i32
    return %arg0, %c0_i32, %c0_i32_0 : i32, i32, i32
  }
  func.func @transform_1(%arg0: i32) -> (i32, i32, i32) {
    %c0_i32 = arith.constant 0 : i32
    %c0_i32_0 = arith.constant 0 : i32
    %c0_i32_1 = arith.constant 0 : i32
    %c0_i32_2 = arith.constant 0 : i32
    return %c0_i32, %c0_i32_0, %c0_i32_1 : i32, i32, i32
  }
  func.func @transform_2(%arg0: i32) -> (i32, i32, i32) {
    %c0_i32 = arith.constant 0 : i32
    %c0_i32_0 = arith.constant 0 : i32
    %c0_i32_1 = arith.constant 0 : i32
    return %arg0, %c0_i32, %c0_i32_0 : i32, i32, i32
  }
}

</mosaic_0001>

<bundles_post_ra>
// kernel: tpu_custom_call.1
= control target key start
LH: loop header
LB: loop body
LE: loop exit
PB: predicated region body
PF: predicated region fallthrough
CT: control target
= control target key end

     0   :  { %7 = vsyncpa [#allocation4], 0  ;;  %s1666_s0 = inlined_call_operand.hbm [shape: f32[2,16,256], index: 0, kind: input, shape index: {}]   ;;  %s1667_s1 = inlined_call_operand.hbm [shape: f32[3,3,256], index: 1, kind: input, shape index: {}]   ;;  %s1668_s2 = inlined_call_operand.hbm [shape: f32[2,2,256], index: 2, kind: output, shape index: {}]  }
   0x1   :  { %9 = vsyncpa [#allocation4 + $0x1], 0 }
   0x2   :  { %10 = vsyncpa [#allocation7], 0 }
   0x3   :  { %11 = vsyncpa [#allocation5], 0 }
   0x4   :  { %13 = vsyncpa [#allocation5 + $0x1], 0  ;;  %s1200_s9 = smov 0   ;;  %s1202_s10 = smov 0  }
   0x5   :  { %s1204_s11 = smov 0   ;;  %s1206_s12 = smov 0  }
   0x6 LB: > { %s1221_s13 = sadd.s32 4294967295, %s1170_s12   ;;  %s962_s14 = sadd.s32 4294967294, %s1170_s12   ;;  %s1170_s12 = sphi %s1206_s12, %s1690_s12   ;;  %s1166_s11 = sphi %s1204_s11, %s1689_s11   ;;  %s1162_s10 = sphi %s1202_s10, %s1688_s10   ;;  %s1158_s9 = sphi %s1200_s9, %s1687_s9  }
   0x7   : > { %p39_p0 = scmp.ne.s32.totalorder %s1162_s10, %s1158_s9  ;;  %p1669_p1 = scmp.eq.s32.totalorder %s1221_s13, 0 }
   0x8   : > { %p90_p3 = scmp.eq.s32.totalorder %s962_s14, 1  ;;  %p963_p5 = scmp.ge.s32.totalorder %s1170_s12, 1 }
   0x9   : > { %p1230_p4 = por %p1669_p1, %p39_p0  ;;  %p97_p7 = scmp.lt.s32.totalorder %s1170_s12, 3 }
   0xa   : > { %p1235_p6 = por %p90_p3, %p39_p0  ;;  %s1172_s18 = smov [#allocation6]  }
   0xb   : > { %s1673_s15 = scalar_select %p1230_p4, 1, 0 }
   0xc   : > { %s1674_s16 = scalar_select %p1235_p6, 1, 0 }
   0xd   : > { %p1240_p8 = pnand %p963_p5, %p97_p7  ;;  %s109_s19 = sshll.u32 %s1172_s18, 4  ;;  %s110_s19 = int_to_ptr.vmem [resolvable:$true] %s109_s19 }
   0xe   : > { %s1254_s21 = sadd.s32 1, %s1170_s12   ;;  %s26_s22 = sadd.s32 1, %s1166_s11 }
   0xf   : > { %s1675_s17 = scalar_select %p1240_p8, 1, 0 }
  0x10   : > { %p989_p9 = pneg %p1240_p8  ;;  %s23_s23 = ssub.s32 %s1170_s12, %s1254_s21 }
  0x11   : > { %s1059_s24 = scalar_lea.vmem %s110_s19, 384  ;;  %p1067_p5 = scmp.lt.s32.totalorder %s110_s19, %s110_s19 }
  0x12   : > { %p1249_p11 = pnand %p989_p9, %p1669_p1  ;;  %p1060_p13 = scmp.ne.s32.totalorder %s110_s19, %s1059_s24 }
  0x13   : > { %p1068_p7 = scmp.lt.s32.totalorder %s1059_s24, %s1059_s24 }
  0x14   : > { %p1050_p12 = pneg %p1249_p11 }
  0x15   : > { %p1069_p10 = por %p1068_p7, %p1067_p5 }
  0x16   : > { %p1062_p0 = pnand %p1060_p13, %p1050_p12 }
  0x18   : > { %p1063_p3 = pneg %p1062_p0 }
  0x1a   : > { %p1070_p2 = pnand %p1069_p10, %p1063_p3 }
  0x1c   : > { %1073 = shalt.err (!%p1070_p2)
}
  0x1d   : > { %s1173_s25 = smov 128   ;;  %s1174_s26 = smov 8  }
  0x1e   : > { %992 = dma.hbm_to_vmem [thread:$0]  (!%p1249_p11), %s1667_s1, 384, %s110_s19, [#allocation7], %s1173_s25, %s1173_s25, %s1174_s26  }
  0x1f   : > { %p24_p9 = scmp.eq.s32.totalorder %s23_s23, 0  ;;  %p33_p12 = scmp.ne.s32.totalorder %s1166_s11, %s1162_s10 }
  0x20   : > { %p34_p10 = scmp.eq.s32.totalorder %s1170_s12, 0  ;;  %p1002_p2 = scmp.lt.s32.totalorder %s1170_s12, 2 }
  0x21   : > { %s1271_s29 = scalar_select %p24_p9, %s1166_s11, %s26_s22  }
  0x22   : > { %p35_p13 = por %p34_p10, %p33_p12  ;;  %p1677_p0 = scmp.eq.s32.totalorder %s1221_s13, 1 }
  0x23   : > { %s123_s3 = sand.u32 1, %s1166_s11   ;;  %s979_s4 = sshll.u32 %s1170_s12, 9 }
  0x24   : > { %p1275_p3 = por %p1677_p0, %p33_p12  ;;  %s966_s5 = sshll.u32 %s123_s3, 5 }
  0x25   : > { %s1284_s8 = scalar_lea.hbm %s1666_s0, %s979_s4  ;;  %s127_s14 = scalar_lea.vmem [#allocation3], %s966_s5 }
  0x26   : > { %s1678_s30 = scalar_select %p1275_p3, 1, 0 }
  0x27   : > { %s134_s18 = sshll.u32 %s127_s14, 4  ;;  %p1286_p11 = pnand %p1002_p2, %p35_p13  ;;  %s1290_s18 = int_to_ptr.vmem [resolvable:$true] %s134_s18 }
  0x28   : > { %s1292_s20 = scalar_lea.sflag [#allocation4], %s123_s3  ;;  %s1074_s22 = scalar_lea.hbm %s1284_s8, 512 }
  0x29   : > { %p1075_p5 = scmp.ne.s32.totalorder %s1284_s8, %s1074_s22  ;;  %p1076_p7 = pneg %p1286_p11 }
  0x2a   : > { %s1079_s25 = scalar_lea.hbm %s1666_s0, 1024  ;;  %p1080_p10 = scmp.lt.s32.totalorder %s1284_s8, %s1666_s0 }
  0x2b   : > { %p1077_p9 = pnand %p1076_p7, %p1075_p5  ;;  %p1081_p2 = scmp.lt.s32.totalorder %s1079_s25, %s1074_s22 }
  0x2d   : > { %p1078_p12 = pneg %p1077_p9  ;;  %p1082_p13 = por %p1081_p2, %p1080_p10 }
  0x2f   : > { %p1083_p0 = pnand %p1082_p13, %p1078_p12 }
  0x31   : > { %1086 = shalt.err (!%p1083_p0)
}
  0x32   : > { %s1087_s28 = scalar_lea.vmem %s1290_s18, 512  ;;  %s1175_s3 = smov [#allocation3]  }
  0x33   : > { %p1088_p1 = scmp.ne.s32.totalorder %s1290_s18, %s1087_s28  ;;  %s1092_s4 = sshll.u32 %s1175_s3, 4  ;;  %s1093_s4 = int_to_ptr.vmem [resolvable:$false] %s1092_s4 }
  0x34   : > { %s1094_s5 = scalar_lea.vmem %s1093_s4, 1024  ;;  %p1095_p9 = scmp.lt.s32.totalorder %s1290_s18, %s1093_s4 }
  0x35   : > { %p1090_p6 = pnand %p1088_p1, %p1076_p7  ;;  %p1096_p3 = scmp.lt.s32.totalorder %s1094_s5, %s1087_s28 }
  0x37   : > { %p1091_p5 = pneg %p1090_p6  ;;  %p1097_p4 = por %p1096_p3, %p1095_p9 }
  0x39   : > { %p1098_p8 = pnand %p1097_p4, %p1091_p5 }
  0x3b   : > { %1101 = shalt.err (!%p1098_p8)
}
  0x3c   : > { %s1176_s6 = smov 256   ;;  %s1177_s7 = smov 16  }
  0x3d   : > { %996 = dma.hbm_to_vmem [thread:$0]  (!%p1286_p11), %s1284_s8, 512, %s1290_s18, %s1292_s20, %s1176_s6, %s1176_s6, %s1177_s7  }
  0x3e   : > { %p1680_p1 = scmp.ne.s32.totalorder %s1675_s17, 0 }
  0x3f   : > { %s1316_s14 = sand.u32 (!%p1680_p1), 1, %s1162_s10   ;;  %p1681_p4 = scmp.ne.s32.totalorder (!%p1680_p1), %s1673_s15, 0 }
  0x40   : > { %146 = sbr.rel (%p1680_p1) target bundleno = 427 (0x1ab), region = 28  ;;  %s970_s22 = sshll.u32 (!%p1680_p1), %s1316_s14, 5 }
  0x41   : > { %s149_s23 = scalar_lea.sflag (!%p1680_p1), [#allocation4], %s1316_s14  ;;  %s152_s24 = scalar_lea.vmem (!%p1680_p1), [#allocation3], %s970_s22 }
  0x45   : > { %1145 = dma.done.wait (%p1681_p4), %s149_s23, 512  }
  0x46   : > { %1147 = vsyncadd (%p1681_p4), %s149_s23, 4294966784  ;;  %p1682_p6 = scmp.eq.s32.totalorder %s1221_s13, 0 }
  0x48   : > { %1149 = dma.done.wait (%p1682_p6), [#allocation7], 384   ;;  %p1683_p8 = pmov %p1682_p6 }
  0x49   : > { %vm186_vm0 = vcmask 254976   ;;  %v1178_v0 = vmov 0.0   ;;  %vm179_vm1 = vcmask 261120   ;;  %v250_v1 = vlaneseq  ;;  %v191_v2 = vld [vmem:[%s152_s24 + $0x18] sm:$0xff]  ;;  %v188_v3 = vld [vmem:[%s152_s24] sm:$0xff]  ;;  %v189_v4 = vld [vmem:[%s152_s24 + $0x8] sm:$0xff] }
  0x4a   : > { %1151 = vsyncadd (%p1683_p8), [#allocation7], 4294966912  ;;  %177 = vst [vmem:[#allocation2] sm:$0xff] %v1178_v0  ;;  %v201_v5 = vrot.slane %v191_v2, 7  ;;  %v197_v6 = vrot.slane %v188_v3, 7  ;;  %v190_v7 = vld [vmem:[%s152_s24 + $0x10] sm:$0xff] }
  0x4b   : > { %178 = vst [vmem:[#allocation2 + $0x8] sm:$0xff] %v1178_v0  ;;  %181 = vst [vmem:[#allocation2 + $0x18] sm:$0xff] %v1178_v0  ;;  %vm196_vm2 = vcmask 1040384   ;;  %v199_v8 = vrot.slane %v190_v7, 7  ;;  %s1179_s15 = smov 16   ;;  %v198_v9 = vrot.slane %v189_v4, 7 }
  0x4c   : > { %184 = vst [vmem:[#allocation2 + $0x30] sm:$0x3] %v1178_v0  ;;  %185 = vst [vmem:[#allocation2 + $0x38] sm:$0x3] %v1178_v0  ;;  %213 = vrot.lane.b32.xlu1 %v201_v5, %s1179_s15  ;;  %203 = vrot.lane.b32.xlu0 %v197_v6, %s1179_s15  ;;  %v1333_v10 = vshrl.u32 %v250_v1, 7  ;;  %s1180_s17 = smov 32  }
  0x4d   : > { %187 = vst.msk [vmem:[#allocation2 + $0x40] sm:$0x3] %vm186_vm0, %v1178_v0  ;;  %v200_v11 = vsel %vm196_vm2, %v197_v6, %v199_v8  ;;  %v202_v14 = vsel %vm196_vm2, %v198_v9, %v201_v5  ;;  %v269_v15 = vld [vmem:[#allocation6 + $0x1] ss:$4 sm:$0x3]  ;;  %vm240_vm3 = vcmask 122880  }
  0x4e   : > { %180 = vst.msk [vmem:[#allocation2 + $0x10] sm:$0xff] %vm179_vm1, %v1178_v0  ;;  %183 = vst.msk [vmem:[#allocation2 + $0x28] sm:$0xff] %vm179_vm1, %v1178_v0  ;;  %v252_v12 = vsub.s32 0, %v1333_v10  ;;  %v256_v13 = vsub.s32 1, %v1333_v10  ;;  %vm228_vm4 = vcmask 1047681   ;;  %vm215_vm5 = vcmask 130048  }
  0x4f   : > { %v325_v18 = vld [vmem:[#allocation6 + $0x2] ss:$4 sm:$0x3]  ;;  %v431_v21 = vld [vmem:[#allocation6 + $0x9] ss:$4 sm:$0x3] }
  0x50   : > { %205 = vrot.lane.b32.xlu0 %v198_v9, %s1179_s15  ;;  %207 = vrot.lane.b32.xlu1 %v200_v11, %s1179_s15  ;;  %v274_v16 = vrot.slane %v269_v15, %v252_v12  ;;  %v278_v17 = vrot.slane %v269_v15, %v256_v13  ;;  %v330_v19 = vrot.slane %v325_v18, %v252_v12  ;;  %v507_v24 = vld [vmem:[#allocation6 + $0xa] ss:$4 sm:$0x3]  ;;  %v633_v27 = vld [vmem:[#allocation6 + $0x11] ss:$4 sm:$0x3] }
  0x51   : > { %v334_v20 = vrot.slane %v325_v18, %v256_v13  ;;  %v436_v22 = vrot.slane %v431_v21, %v252_v12  ;;  %v440_v23 = vrot.slane %v431_v21, %v256_v13  ;;  %v512_v25 = vrot.slane %v507_v24, %v252_v12  ;;  %v709_v30 = vld [vmem:[#allocation6 + $0x12] ss:$4 sm:$0x3]  ;;  %v387_v35 = vld [vmem:[#allocation6 + $0x8] ss:$4 sm:$0x3] }
  0x52   : > { %v516_v26 = vrot.slane %v507_v24, %v256_v13  ;;  %v638_v28 = vrot.slane %v633_v27, %v252_v12  ;;  %v642_v29 = vrot.slane %v633_v27, %v256_v13  ;;  %v714_v31 = vrot.slane %v709_v30, %v252_v12  ;;  %v248_v36 = vld [vmem:[#allocation6] ss:$4 sm:$0x3]  ;;  %v589_v37 = vld [vmem:[#allocation6 + $0x10] ss:$4 sm:$0x3] }
  0x53   : > { %v718_v32 = vrot.slane %v709_v30, %v256_v13  ;;  %vm231_vm6 = vcmask 130049   ;;  %vm233_vm7 = vcmask 1047680   ;;  %vm237_vm8 = vcmask 1040512   ;;  %s1181_s8 = smov 112   ;;  %s1182_s18 = smov 96  }
  0x54   : > { %211 = vrot.lane.b32.xlu0 %v199_v8, %s1179_s15  ;;  %209 = vrot.lane.b32.xlu1 %v202_v14, %s1179_s15  ;;  %v392_v41 = vrot.slane %v387_v35, %v252_v12  ;;  %v253_v42 = vrot.slane %v248_v36, %v252_v12  ;;  %v594_v43 = vrot.slane %v589_v37, %v252_v12  ;;  %vm411_vm9 = vcmask 1046528   ;;  %s972_s19 = sshll.u32 %s1316_s14, 2  ;;  %s980_s20 = sshll.u32 %s1221_s13, 6 }
  0x55   : > { %v257_v44 = vrot.slane %v248_v36, %v256_v13  ;;  %v396_v45 = vrot.slane %v387_v35, %v256_v13  ;;  %v1348_v46 = vrot.slane %v589_v37, %v256_v13  ;;  %vm613_vm10 = vcmask 1045504   ;;  %s176_s25 = scalar_lea.vmem [#allocation8], %s972_s19  ;;  %s876_s3 = scalar_lea.hbm %s1668_s2, %s980_s20 }
  0x56   : > { %vm311_vm11 = vcmask 916480   ;;  %vm367_vm12 = vcmask 785408   ;;  %vm840_vm13 = vcmp.lt.s32.totalorder %v250_v1, 256  ;;  %s878_s26 = sshll.u32 %s176_s25, 4  ;;  %s864_s4 = scalar_lea.sflag [#allocation5], %s1316_s14  ;;  %s879_s26 = int_to_ptr.vmem [resolvable:$true] %s878_s26 }
  0x57   : > { %s1102_s5 = scalar_lea.vmem %s879_s26, 64  ;;  %p1684_p11 = scmp.ne.s32.totalorder %s1678_s30, 0 }
  0x58   : > { %279 = vrot.lane.b32.xlu0 %v274_v16, %s1179_s15  ;;  %281 = vrot.lane.b32.xlu1 %v278_v17, %s1179_s15  ;;  %p1103_p3 = scmp.ne.s32.totalorder %s879_s26, %s1102_s5  ;;  %s1184_s6 = smov [#allocation8]  }
  0x59   : > { %s1106_s13 = sshll.u32 %s1184_s6, 4  ;;  %s1107_s13 = int_to_ptr.vmem [resolvable:$false] %s1106_s13 }
  0x5a   : > { %p1104_p7 = pnand %p1103_p3, %p1684_p11  ;;  %s1108_s7 = scalar_lea.vmem %s1107_s13, 128 }
  0x5b   : > { %p1109_p10 = scmp.lt.s32.totalorder %s879_s26, %s1107_s13  ;;  %p1110_p2 = scmp.lt.s32.totalorder %s1108_s7, %s1102_s5 }
  0x5c   : > { %335 = vrot.lane.b32.xlu0 %v330_v19, %s1180_s17  ;;  %337 = vrot.lane.b32.xlu1 %v334_v20, %s1180_s17  ;;  %p1105_p12 = pneg %p1104_p7 }
  0x5d   : > { %p1111_p13 = por %p1110_p2, %p1109_p10 }
  0x5f   : > { %p1112_p0 = pnand %p1111_p13, %p1105_p12 }
  0x60   : > { %441 = vrot.lane.b32.xlu0 %v436_v22, %s1179_s15  ;;  %443 = vrot.lane.b32.xlu1 %v440_v23, %s1179_s15 }
  0x64   : > { %517 = vrot.lane.b32.xlu0 %v512_v25, %s1180_s17  ;;  %519 = vrot.lane.b32.xlu1 %v516_v26, %s1180_s17 }
  0x68   : > { %643 = vrot.lane.b32.xlu0 %v638_v28, %s1179_s15  ;;  %645 = vrot.lane.b32.xlu1 %v642_v29, %s1179_s15 }
  0x6c   : > { %719 = vrot.lane.b32.xlu0 %v714_v31, %s1180_s17  ;;  %721 = vrot.lane.b32.xlu1 %v718_v32, %s1180_s17 }
  0xbe   : > { %v214_v33 = vpop.permute.xlu1 %213  ;;  %v204_v34 = vpop.permute.xlu0 %203 }
  0xbf   : > { %241 = vst.msk [vmem:[#allocation2 + $0x40] sm:$0x1] %vm240_vm3, %v214_v33 }
  0xc0   : > { %229 = vst.msk [vmem:[#allocation2] sm:$0xfe] %vm228_vm4, %v204_v34 }
  0xc2   : > { %v206_v38 = vpop.permute.xlu0 %205  ;;  %v208_v39 = vpop.permute.xlu1 %207 }
  0xc3   : > { %v216_v40 = vsel %vm215_vm5, %v204_v34, %v206_v38  ;;  %232 = vst.msk [vmem:[#allocation2 + $0x10] sm:$0xfe] %vm231_vm6, %v206_v38 }
  0xc4   : > { %234 = vst.msk [vmem:[#allocation2 + $0x18] sm:$0xff] %vm233_vm7, %v208_v39  ;;  %230 = vst [vmem:[#allocation2 + $0x8] sm:$0xfe] %v216_v40 }
  0xc6   : > { %v212_v47 = vpop.permute.xlu0 %211  ;;  %v210_v48 = vpop.permute.xlu1 %209 }
  0xc7   : > { %v242_v49 = vld [vmem:[#allocation2] sm:$0xff]  ;;  %v218_v51 = vsel %vm215_vm5, %v212_v47, %v214_v33  ;;  %238 = vst.msk [vmem:[#allocation2 + $0x30] sm:$0x1] %vm237_vm8, %v212_v47  ;;  %v1354_v52 = vsel %vm215_vm5, %v208_v39, %v210_v48 }
  0xc8   : > { %v1350_v50 = vld [vmem:[#allocation2] sm:$0xfe]  ;;  %236 = vst.msk [vmem:[#allocation2 + $0x28] sm:$0xff] %vm215_vm5, %v210_v48  ;;  %v1362_v55 = vmul.f32 %v253_v42, %v242_v49  ;;  %239 = vst [vmem:[#allocation2 + $0x38] sm:$0x1] %v218_v51  ;;  %v1368_v57 = vmul.f32 %v257_v44, %v1354_v52  ;;  %v1371_v58 = vmul.f32 %v396_v45, %v1354_v52 }
  0xc9   : > { %v1358_v53 = vmul.f32 %v392_v41, %v1350_v50  ;;  %v1360_v54 = vld [vmem:[#allocation2] sm:$0xfc]  ;;  %v1375_v59 = vmul.f32 %v1348_v46, %v1354_v52 }
  0xca   : > { %v1365_v56 = vmul.f32 %v594_v43, %v1360_v54  ;;  %v280_v60 = vpop.permute.xlu0 %279  ;;  %v282_v62 = vpop.permute.xlu1 %281  ;;  %v244_v4 = vld [vmem:[#allocation2 + $0x10] sm:$0xff] }
  0xcb   : > { %v1377_v61 = vld [vmem:[#allocation2 + $0x18] sm:$0xff]  ;;  %v287_v63 = vmul.f32 %v280_v60, %v242_v49  ;;  %v283_v0 = vsel %vm215_vm5, %v280_v60, %v282_v62  ;;  %v243_v2 = vld [vmem:[#allocation2 + $0x8] sm:$0xff]  ;;  %v289_v16 = vmul.f32 %v282_v62, %v244_v4  ;;  %v382_v37 = vld [vmem:[#allocation2 + $0x10] sm:$0xfe] }
  0xcc   : > { %v1380_v3 = vld [vmem:[#allocation2 + $0x8] sm:$0xfe]  ;;  %v288_v5 = vmul.f32 %v283_v0, %v243_v2  ;;  %v1384_v7 = vmul.f32 %v257_v44, %v243_v2  ;;  %v1388_v8 = vmul.f32 %v253_v42, %v1377_v61  ;;  %v1394_v11 = vmul.f32 %v392_v41, %v1377_v61  ;;  %v385_v42 = vld [vmem:[#allocation2 + $0x40] sm:$0x1] }
  0xcd   : > { %v1382_v6 = vld [vmem:[#allocation2 + $0x8] sm:$0xfc]  ;;  %299 = vrot.lane.b32.xlu0 %v287_v63, %s1181_s8  ;;  %v1391_v9 = vmul.f32 %v396_v45, %v1380_v3  ;;  %v1404_v15 = vmul.f32 %v594_v43, %v1377_v61  ;;  %v290_v18 = vmul.f32 %v280_v60, %v1377_v61  ;;  %v291_v31 = vmul.f32 %v283_v0, %v1354_v52 }
  0xce   : > { %v1398_v12 = vmul.f32 %v1348_v46, %v1382_v6  ;;  %301 = vrot.lane.b32.xlu1 %v288_v5, %s1181_s8  ;;  %v383_v13 = vld [vmem:[#allocation2 + $0x30] sm:$0x1]  ;;  %v336_v19 = vpop.permute.xlu0 %335  ;;  %v338_v23 = vpop.permute.xlu1 %337 }
  0xcf   : > { %v1401_v14 = vld [vmem:[#allocation2 + $0x30] sm:$0x3]  ;;  %v1406_v17 = vld [vmem:[#allocation2 + $0x38] sm:$0x1]  ;;  %v1409_v20 = vmul.f32 %v392_v41, %v383_v13  ;;  %v1414_v22 = vld [vmem:[#allocation2 + $0x28] sm:$0xff]  ;;  %v343_v25 = vmul.f32 %v336_v19, %v242_v49  ;;  %v339_v27 = vsel %vm179_vm1, %v336_v19, %v338_v23  ;;  %v345_v28 = vmul.f32 %v338_v23, %v244_v4 }
  0xd0   : > { %v1412_v21 = vmul.f32 %v594_v43, %v1401_v14  ;;  %v1419_v24 = vmul.f32 %v396_v45, %v1406_v17  ;;  %v292_v26 = vmul.f32 %v282_v62, %v1414_v22  ;;  %v344_v29 = vmul.f32 %v339_v27, %v243_v2 }
  0xd1   : > { %303 = vrot.lane.b32.xlu0 %v289_v16, %s1181_s8  ;;  %v346_v32 = vmul.f32 %v336_v19, %v1377_v61  ;;  %v347_v40 = vmul.f32 %v339_v27, %v1354_v52  ;;  %v348_v41 = vmul.f32 %v338_v23, %v1414_v22  ;;  %v412_v16 = vrot.slane %v1358_v53, 1 }
  0xd2   : > { %305 = vrot.lane.b32.xlu1 %v290_v18, %s1181_s8  ;;  %v1425_v30 = vpop.permute.xlu0 %441  ;;  %v1435_v35 = vpop.permute.xlu1 %443  ;;  %v415_v19 = vrot.slane %v1391_v9, 1  ;;  %v617_v27 = vrot.slane %v1398_v12, 2  ;;  %v618_v53 = vrot.slane %v1375_v59, 2  ;;  %v615_v9 = vrot.slane %v1404_v15, 2 }
  0xd3   : > { %v449_v33 = vmul.f32 %v1425_v30, %v1350_v50  ;;  %v452_v34 = vmul.f32 %v1425_v30, %v1377_v61  ;;  %v455_v36 = vmul.f32 %v1425_v30, %v383_v13  ;;  %v451_v38 = vmul.f32 %v1435_v35, %v382_v37 }
  0xd4   : > { %v454_v39 = vmul.f32 %v1435_v35, %v1414_v22  ;;  %v457_v45 = vmul.f32 %v1435_v35, %v385_v42 }
  0xd5   : > { %355 = vrot.lane.b32.xlu0 %v343_v25, %s1182_s18  ;;  %v467_v43 = vrot.slane %v449_v33, 1  ;;  %v468_v44 = vrot.slane %v452_v34, 1  ;;  %v476_v48 = vrot.slane %v455_v36, 1  ;;  %v473_v51 = vrot.slane %v451_v38, 1  ;;  %v1482_v34 = vld [vmem:[#allocation2 + $0x38] sm:$0x3] }
  0xd6   : > { %309 = vrot.lane.b32.xlu1 %v292_v26, %s1181_s8  ;;  %v1446_v47 = vpop.permute.xlu0 %517  ;;  %v1450_v49 = vpop.permute.xlu1 %519  ;;  %v474_v60 = vrot.slane %v454_v39, 1  ;;  %v480_v5 = vrot.slane %v457_v45, 1  ;;  %v413_v25 = vrot.slane %v1394_v11, 1  ;;  %v418_v26 = vrot.slane %v1409_v20, 1 }
  0xd7   : > { %v525_v62 = vmul.f32 %v1446_v47, %v1350_v50  ;;  %v528_v63 = vmul.f32 %v1446_v47, %v1377_v61  ;;  %v531_v0 = vmul.f32 %v1446_v47, %v383_v13  ;;  %v469_v2 = vsel %vm411_vm9, %v467_v43, %v468_v44 }
  0xd8   : > { %v477_v4 = vsel %vm411_vm9, %v468_v44, %v476_v48  ;;  %v527_v18 = vmul.f32 %v1450_v49, %v382_v37  ;;  %v530_v50 = vmul.f32 %v1450_v49, %v1414_v22  ;;  %v416_v13 = vrot.slane %v1371_v58, 1 }
  0xd9   : > { %359 = vrot.lane.b32.xlu0 %v345_v28, %s1182_s18  ;;  %v475_v28 = vsel %vm411_vm9, %v473_v51, %v474_v60  ;;  %v533_v33 = vmul.f32 %v1450_v49, %v385_v42  ;;  %v481_v58 = vsel %vm411_vm9, %v474_v60, %v480_v5  ;;  %v614_v11 = vrot.slane %v1365_v56, 2  ;;  %v584_v60 = vld [vmem:[#allocation2 + $0x10] sm:$0xfc] }
  0xda   : > { %357 = vrot.lane.b32.xlu1 %v344_v29, %s1182_s18  ;;  %v1467_v23 = vpop.permute.xlu0 %643  ;;  %v543_v29 = vrot.slane %v525_v62, 1  ;;  %v549_v59 = vrot.slane %v527_v18, 1  ;;  %v550_v20 = vrot.slane %v530_v50, 1  ;;  %v1485_v36 = vsel %vm411_vm9, %v415_v19, %v416_v13  ;;  %v1497_v39 = vpop.permute.xlu1 %645 }
  0xdb   : > { %v651_v12 = vmul.f32 %v1467_v23, %v1360_v54  ;;  %v654_v37 = vmul.f32 %v1467_v23, %v1377_v61  ;;  %v657_v15 = vmul.f32 %v1467_v23, %v1401_v14  ;;  %v1492_v56 = vsel %vm411_vm9, %v412_v16, %v413_v25 }
  0xdc   : > { %v1495_v38 = vsel %vm411_vm9, %v413_v25, %v418_v26  ;;  %v420_v42 = vrot.slane %v1419_v24, 1  ;;  %v1503_v43 = vsel %vm613_vm10, %v617_v27, %v618_v53  ;;  %v556_v44 = vrot.slane %v533_v33, 1 }
  0xdd   : > { %307 = vrot.lane.b32.xlu0 %v291_v31, %s1181_s8  ;;  %v544_v31 = vrot.slane %v528_v63, 1  ;;  %v1507_v45 = vsel %vm613_vm10, %v614_v11, %v615_v9  ;;  %v606_v48 = vmul.f32 %v1348_v46, %v1482_v34  ;;  %v620_v51 = vrot.slane %v1412_v21, 2 }
  0xde   : > { %361 = vrot.lane.b32.xlu1 %v346_v32, %s1182_s18  ;;  %v552_v32 = vrot.slane %v531_v0, 1  ;;  %v1514_v62 = vsel %vm411_vm9, %v416_v13, %v420_v42  ;;  %v653_v24 = vmul.f32 %v1497_v39, %v584_v60  ;;  %v551_v46 = vsel %vm411_vm9, %v549_v59, %v550_v20  ;;  %v720_v18 = vpop.permute.xlu0 %719 }
  0xdf   : > { %v1518_v63 = vsel %vm613_vm10, %v615_v9, %v620_v51  ;;  %v622_v0 = vrot.slane %v606_v48, 2  ;;  %v669_v21 = vrot.slane %v651_v12, 2  ;;  %v670_v5 = vrot.slane %v654_v37, 2 }
  0xe0   : > { %v557_v50 = vsel %vm411_vm9, %v550_v20, %v556_v44  ;;  %v678_v19 = vrot.slane %v657_v15, 2  ;;  %v445_v25 = vsel %vm215_vm5, %v1425_v30, %v1435_v35  ;;  %v675_v26 = vrot.slane %v653_v24, 2 }
  0xe1   : > { %363 = vrot.lane.b32.xlu0 %v347_v40, %s1182_s18  ;;  %v545_v40 = vsel %vm411_vm9, %v543_v29, %v544_v31  ;;  %v1530_v13 = vsel %vm613_vm10, %v618_v53, %v622_v0  ;;  %v727_v27 = vmul.f32 %v720_v18, %v1360_v54  ;;  %v722_v29 = vpop.permute.xlu1 %721  ;;  %v733_v33 = vmul.f32 %v720_v18, %v1401_v14 }
  0xe2   : > { %365 = vrot.lane.b32.xlu1 %v348_v41, %s1182_s18  ;;  %v553_v41 = vsel %vm411_vm9, %v544_v31, %v552_v32  ;;  %v671_v31 = vsel %vm613_vm10, %v669_v21, %v670_v5  ;;  %v679_v53 = vsel %vm613_vm10, %v670_v5, %v678_v19  ;;  %v729_v9 = vmul.f32 %v722_v29, %v584_v60 }
  0xe3   : > { %v450_v30 = vmul.f32 %v445_v25, %v1380_v3  ;;  %v453_v54 = vmul.f32 %v445_v25, %v1354_v52  ;;  %v745_v11 = vrot.slane %v727_v27, 2  ;;  %v754_v59 = vrot.slane %v733_v33, 2 }
  0xe4   : > { %v521_v20 = vsel %vm179_vm1, %v1446_v47, %v1450_v49  ;;  %v751_v37 = vrot.slane %v729_v9, 2  ;;  %v456_v42 = vmul.f32 %v445_v25, %v1406_v17  ;;  %v647_v47 = vsel %vm215_vm5, %v1467_v23, %v1497_v39 }
  0xe5   : > { %482 = vrot.lane.b32.xlu0 %v469_v2, %s1181_s8  ;;  %v1520_v2 = vld [vmem:[#allocation2 + $0x40] sm:$0x3]  ;;  %v470_v15 = vrot.slane %v450_v30, 1  ;;  %v526_v48 = vmul.f32 %v521_v20, %v1380_v3  ;;  %v529_v51 = vmul.f32 %v521_v20, %v1354_v52  ;;  %v723_v49 = vsel %vm179_vm1, %v720_v18, %v722_v29 }
  0xe6   : > { %488 = vrot.lane.b32.xlu1 %v477_v4, %s1181_s8  ;;  %v656_v4 = vmul.f32 %v1497_v39, %v1414_v22  ;;  %v659_v16 = vmul.f32 %v1497_v39, %v1520_v2  ;;  %v478_v0 = vrot.slane %v456_v42, 1  ;;  %v652_v21 = vmul.f32 %v647_v47, %v1382_v6 }
  0xe7   : > { %v546_v3 = vrot.slane %v526_v48, 1  ;;  %v655_v5 = vmul.f32 %v647_v47, %v1354_v52  ;;  %v731_v25 = vmul.f32 %v723_v49, %v1354_v52 }
  0xe8   : > { %v676_v32 = vrot.slane %v656_v4, 2  ;;  %v532_v4 = vmul.f32 %v521_v20, %v1406_v17 }
  0xe9   : > { %486 = vrot.lane.b32.xlu0 %v475_v28, %s1181_s8  ;;  %v730_v28 = vmul.f32 %v720_v18, %v1377_v61  ;;  %v732_v61 = vmul.f32 %v722_v29, %v1414_v22  ;;  %v728_v18 = vmul.f32 %v723_v49, %v1382_v6  ;;  %v673_v19 = vrot.slane %v655_v5, 2 }
  0xea   : > { %492 = vrot.lane.b32.xlu1 %v481_v58, %s1181_s8  ;;  %v682_v58 = vrot.slane %v659_v16, 2  ;;  %v677_v35 = vsel %vm613_vm10, %v675_v26, %v676_v32  ;;  %v554_v39 = vrot.slane %v532_v4, 1  ;;  %v658_v16 = vmul.f32 %v647_v47, %v1482_v34 }
  0xeb   : > { %v746_v12 = vrot.slane %v730_v28, 2  ;;  %v752_v22 = vrot.slane %v732_v61, 2  ;;  %v734_v28 = vmul.f32 %v723_v49, %v1482_v34  ;;  %v749_v33 = vrot.slane %v731_v25, 2 }
  0xec   : > { %v683_v14 = vsel %vm613_vm10, %v676_v32, %v682_v58  ;;  %v680_v27 = vrot.slane %v658_v16, 2  ;;  %v748_v32 = vrot.slane %v728_v18, 2 }
  0xed   : > { %558 = vrot.lane.b32.xlu0 %v545_v40, %s1182_s18  ;;  %v747_v40 = vsel %vm613_vm10, %v745_v11, %v746_v12  ;;  %v755_v44 = vsel %vm613_vm10, %v746_v12, %v754_v59  ;;  %v753_v60 = vsel %vm613_vm10, %v751_v37, %v752_v22  ;;  %v756_v52 = vrot.slane %v734_v28, 2 }
  0xee   : > { %564 = vrot.lane.b32.xlu1 %v553_v41, %s1182_s18  ;;  %v471_v41 = vrot.slane %v453_v54, 1  ;;  %v750_v58 = vsel %vm613_vm10, %v748_v32, %v749_v33 }
  0xef   : > { %v757_v34 = vsel %vm613_vm10, %v749_v33, %v756_v52 }
  0xf0   : > { %v472_v24 = vsel %vm411_vm9, %v470_v15, %v471_v41  ;;  %v479_v23 = vsel %vm411_vm9, %v471_v41, %v478_v0 }
  0xf1   : > { %562 = vrot.lane.b32.xlu0 %v551_v46, %s1182_s18  ;;  %v547_v46 = vrot.slane %v529_v51, 1 }
  0xf2   : > { %568 = vrot.lane.b32.xlu1 %v557_v50, %s1182_s18  ;;  %v672_v50 = vrot.slane %v652_v21, 2 }
  0xf3   : > { %v548_v17 = vsel %vm411_vm9, %v546_v3, %v547_v46  ;;  %v555_v26 = vsel %vm411_vm9, %v547_v46, %v554_v39 }
  0xf4   : > { %v674_v6 = vsel %vm613_vm10, %v672_v50, %v673_v19 }
  0xf5   : > { %684 = vrot.lane.b32.xlu0 %v671_v31, %s1181_s8  ;;  %v735_v31 = vmul.f32 %v722_v29, %v1520_v2 }
  0xf6   : > { %690 = vrot.lane.b32.xlu1 %v679_v53, %s1181_s8  ;;  %v681_v53 = vsel %vm613_vm10, %v673_v19, %v680_v27 }
  0xf7   : > { %v758_v9 = vrot.slane %v735_v31, 2 }
  0xf9   : > { %688 = vrot.lane.b32.xlu0 %v677_v35, %s1181_s8  ;;  %v759_v2 = vsel %vm613_vm10, %v752_v22, %v758_v9 }
  0xfa   : > { %694 = vrot.lane.b32.xlu1 %v683_v14, %s1181_s8 }
  0xfd   : > { %760 = vrot.lane.b32.xlu0 %v747_v40, %s1182_s18 }
  0xfe   : > { %766 = vrot.lane.b32.xlu1 %v755_v44, %s1182_s18 }
 0x101   : > { %764 = vrot.lane.b32.xlu0 %v753_v60, %s1182_s18 }
 0x102   : > { %484 = vrot.lane.b32.xlu1 %v472_v24, %s1181_s8 }
 0x105   : > { %490 = vrot.lane.b32.xlu0 %v479_v23, %s1181_s8 }
 0x106   : > { %560 = vrot.lane.b32.xlu1 %v548_v17, %s1182_s18 }
 0x109   : > { %566 = vrot.lane.b32.xlu0 %v555_v26, %s1182_s18 }
 0x10a   : > { %686 = vrot.lane.b32.xlu1 %v674_v6, %s1181_s8 }
 0x10d   : > { %692 = vrot.lane.b32.xlu0 %v681_v53, %s1181_s8 }
 0x10e   : > { %762 = vrot.lane.b32.xlu1 %v750_v58, %s1182_s18 }
 0x111   : > { %768 = vrot.lane.b32.xlu0 %v757_v34, %s1182_s18 }
 0x112   : > { %770 = vrot.lane.b32.xlu1 %v759_v2, %s1182_s18 }
 0x13f   : > { %v300_v29 = vpop.permute.xlu0 %299 }
 0x140   : > { %v302_v30 = vpop.permute.xlu1 %301 }
 0x141   : > { %v312_v12 = vsel %vm311_vm11, %v300_v29, %v302_v30 }
 0x142   : > { %v320_v20 = vadd.f32 %v312_v12, %v1362_v55 }
 0x143   : > { %v304_v54 = vpop.permute.xlu0 %303 }
 0x144   : > { %v306_v61 = vpop.permute.xlu1 %305  ;;  %v313_v14 = vsel %vm311_vm11, %v302_v30, %v304_v54 }
 0x145   : > { %v321_v37 = vadd.f32 %v313_v14, %v1384_v7 }
 0x147   : > { %v356_v35 = vpop.permute.xlu0 %355 }
 0x148   : > { %v310_v11 = vpop.permute.xlu1 %309 }
 0x14b   : > { %v360_v59 = vpop.permute.xlu0 %359 }
 0x14c   : > { %v358_v15 = vpop.permute.xlu1 %357 }
 0x14d   : > { %v368_v40 = vsel %vm367_vm12, %v356_v35, %v358_v15  ;;  %v369_v22 = vsel %vm367_vm12, %v358_v15, %v360_v59 }
 0x14e   : > { %v376_v41 = vadd.f32 %v368_v40, %v320_v20  ;;  %v377_v42 = vadd.f32 %v369_v22, %v321_v37 }
 0x14f   : > { %v308_v44 = vpop.permute.xlu0 %307 }
 0x150   : > { %v314_v48 = vsel %vm311_vm11, %v306_v61, %v308_v44  ;;  %v362_v51 = vpop.permute.xlu1 %361  ;;  %v426_v47 = vadd.f32 %v1492_v56, %v376_v41  ;;  %v427_v49 = vadd.f32 %v1485_v36, %v377_v42  ;;  %v315_v60 = vsel %vm311_vm11, %v308_v44, %v310_v11 }
 0x151   : > { %v322_v55 = vadd.f32 %v314_v48, %v1388_v8  ;;  %v323_v24 = vadd.f32 %v315_v60, %v1368_v57 }
 0x153   : > { %v364_v7 = vpop.permute.xlu0 %363 }
 0x154   : > { %v370_v0 = vsel %vm367_vm12, %v362_v51, %v364_v7  ;;  %v366_v4 = vpop.permute.xlu1 %365 }
 0x155   : > { %v378_v3 = vadd.f32 %v370_v0, %v322_v55  ;;  %v371_v46 = vsel %vm367_vm12, %v364_v7, %v366_v4 }
 0x156   : > { %v379_v21 = vadd.f32 %v371_v46, %v323_v24 }
 0x157   : > { %v483_v5 = vpop.permute.xlu0 %482  ;;  %v428_v23 = vadd.f32 %v1495_v38, %v378_v3 }
 0x158   : > { %v489_v56 = vpop.permute.xlu1 %488  ;;  %v429_v36 = vadd.f32 %v1514_v62, %v379_v21 }
 0x15b   : > { %v487_v39 = vpop.permute.xlu0 %486 }
 0x15c   : > { %v493_v16 = vpop.permute.xlu1 %492 }
 0x15f   : > { %v559_v18 = vpop.permute.xlu0 %558 }
 0x160   : > { %v565_v8 = vpop.permute.xlu1 %564 }
 0x163   : > { %v563_v17 = vpop.permute.xlu0 %562 }
 0x164   : > { %v569_v50 = vpop.permute.xlu1 %568 }
 0x167   : > { %v685_v57 = vpop.permute.xlu0 %684 }
 0x168   : > { %v691_v19 = vpop.permute.xlu1 %690 }
 0x16b   : > { %v689_v25 = vpop.permute.xlu0 %688 }
 0x16c   : > { %v695_v26 = vpop.permute.xlu1 %694 }
 0x16f   : > { %v761_v27 = vpop.permute.xlu0 %760 }
 0x170   : > { %v767_v28 = vpop.permute.xlu1 %766 }
 0x173   : > { %v765_v31 = vpop.permute.xlu0 %764 }
 0x174   : > { %v485_v6 = vpop.permute.xlu1 %484 }
 0x175   : > { %v494_v32 = vsel %vm311_vm11, %v483_v5, %v485_v6  ;;  %v495_v38 = vsel %vm311_vm11, %v485_v6, %v487_v39 }
 0x176   : > { %v502_v62 = vadd.f32 %v494_v32, %v426_v47  ;;  %v503_v53 = vadd.f32 %v495_v38, %v427_v49 }
 0x177   : > { %v491_v33 = vpop.permute.xlu0 %490 }
 0x178   : > { %v496_v52 = vsel %vm311_vm11, %v489_v56, %v491_v33  ;;  %v497_v58 = vsel %vm311_vm11, %v491_v33, %v493_v16  ;;  %v561_v9 = vpop.permute.xlu1 %560 }
 0x179   : > { %v570_v34 = vsel %vm367_vm12, %v559_v18, %v561_v9  ;;  %v571_v2 = vsel %vm367_vm12, %v561_v9, %v563_v17  ;;  %v504_v54 = vadd.f32 %v496_v52, %v428_v23  ;;  %v505_v61 = vadd.f32 %v497_v58, %v429_v36 }
 0x17a   : > { %v578_v29 = vadd.f32 %v570_v34, %v502_v62  ;;  %v579_v30 = vadd.f32 %v571_v2, %v503_v53 }
 0x17b   : > { %v567_v35 = vpop.permute.xlu0 %566 }
 0x17c   : > { %v572_v11 = vsel %vm367_vm12, %v565_v8, %v567_v35  ;;  %v573_v12 = vsel %vm367_vm12, %v567_v35, %v569_v50  ;;  %v687_v14 = vpop.permute.xlu1 %686  ;;  %v628_v59 = vadd.f32 %v1507_v45, %v578_v29  ;;  %v629_v20 = vadd.f32 %v1503_v43, %v579_v30 }
 0x17d   : > { %v580_v37 = vadd.f32 %v572_v11, %v504_v54  ;;  %v581_v15 = vadd.f32 %v573_v12, %v505_v61  ;;  %v696_v40 = vsel %vm311_vm11, %v685_v57, %v687_v14  ;;  %v697_v22 = vsel %vm311_vm11, %v687_v14, %v689_v25 }
 0x17e   : > { %v704_v47 = vadd.f32 %v696_v40, %v628_v59  ;;  %v705_v60 = vadd.f32 %v697_v22, %v629_v20  ;;  %v1183_v25 = vmov 1966171168  }
 0x17f   : > { %v630_v41 = vadd.f32 %v1518_v63, %v580_v37  ;;  %v631_v42 = vadd.f32 %v1530_v13, %v581_v15  ;;  %v693_v44 = vpop.permute.xlu0 %692 }
 0x180   : > { %v698_v48 = vsel %vm311_vm11, %v691_v19, %v693_v44  ;;  %v763_v51 = vpop.permute.xlu1 %762  ;;  %v699_v49 = vsel %vm311_vm11, %v693_v44, %v695_v26  ;;  %v824_v26 = vunpack.c.l.s4 %v1183_v25 }
 0x181   : > { %v772_v45 = vsel %vm367_vm12, %v761_v27, %v763_v51  ;;  %v773_v43 = vsel %vm367_vm12, %v763_v51, %v765_v31  ;;  %v706_v55 = vadd.f32 %v698_v48, %v630_v41  ;;  %v707_v0 = vadd.f32 %v699_v49, %v631_v42 }
 0x182   : > { %v780_v7 = vadd.f32 %v772_v45, %v704_v47  ;;  %v781_v4 = vadd.f32 %v773_v43, %v705_v60  ;;  %v825_v53 = vunpack.c.0.s8 %v824_v26 }
 0x183   : > { %v769_v24 = vpop.permute.xlu0 %768 }
 0x184   : > { %v774_v63 = vsel %vm367_vm12, %v767_v28, %v769_v24  ;;  %v771_v13 = vpop.permute.xlu1 %770  ;;  %v800_v5 = vmul.f32 %v780_v7, %v780_v7  ;;  %v801_v36 = vmul.f32 %v781_v4, %v781_v4  ;;  %v828_v61 = vsub.s32 %v825_v53, %v1333_v10 }
 0x185   : > { %v782_v3 = vadd.f32 %v774_v63, %v706_v55  ;;  %v775_v46 = vsel %vm367_vm12, %v769_v24, %v771_v13 }
 0x186   : > { %v783_v21 = vadd.f32 %v775_v46, %v707_v0 }
 0x187   : > { %v784_v23 = vadd.f32 %v782_v3, %v780_v7  ;;  %v802_v56 = vmul.f32 %v782_v3, %v782_v3 }
 0x188   : > { %v791_v39 = vadd.f32 %v783_v21, %v781_v4  ;;  %v803_v16 = vmul.f32 %v783_v21, %v783_v21 }
 0x189   : > { %v785_v18 = vrot.slane %v784_v23, 4  ;;  %v804_v8 = vadd.f32 %v802_v56, %v800_v5 }
 0x18a   : > { %v792_v17 = vrot.slane %v791_v39, 4  ;;  %v811_v50 = vadd.f32 %v803_v16, %v801_v36 }
 0x18b   : > { %v786_v57 = vadd.f32 %v785_v18, %v784_v23  ;;  %v805_v19 = vrot.slane %v804_v8, 4 }
 0x18c   : > { %v793_v27 = vadd.f32 %v792_v17, %v791_v39  ;;  %v812_v28 = vrot.slane %v811_v50, 4 }
 0x18d   : > { %v787_v31 = vrot.slane %v786_v57, 2  ;;  %v806_v6 = vadd.f32 %v805_v19, %v804_v8 }
 0x18e   : > { %v794_v32 = vrot.slane %v793_v27, 2  ;;  %v813_v38 = vadd.f32 %v812_v28, %v811_v50 }
 0x18f   : > { %v788_v33 = vadd.f32 %v787_v31, %v786_v57  ;;  %v807_v62 = vrot.slane %v806_v6, 2 }
 0x190   : > { %v795_v52 = vadd.f32 %v794_v32, %v793_v27  ;;  %v814_v58 = vrot.slane %v813_v38, 2 }
 0x191   : > { %v789_v9 = vrot.slane %v788_v33, 1  ;;  %v808_v34 = vadd.f32 %v807_v62, %v806_v6 }
 0x192   : > { %v796_v2 = vrot.slane %v795_v52, 1  ;;  %v815_v29 = vadd.f32 %v814_v58, %v813_v38 }
 0x193   : > { %v790_v30 = vadd.f32 %v789_v9, %v788_v33  ;;  %v809_v54 = vrot.slane %v808_v34, 1 }
 0x194   : > { %v797_v35 = vadd.f32 %v796_v2, %v795_v52  ;;  %v816_v11 = vrot.slane %v815_v29, 1 }
 0x195   : > { %v810_v12 = vadd.f32 %v809_v54, %v808_v34 }
 0x196   : > { %v817_v14 = vadd.f32 %v816_v11, %v815_v29  ;;  %v822_v59 = vcombine.low %v790_v30, %v797_v35 }
 0x198   : > { %v829_v20 = vrot.slane %v822_v59, %v828_v61  ;;  %v845_v37 = vcombine.low %v810_v12, %v817_v14 }
 0x19a   : > { %v852_v15 = vrot.slane %v845_v37, %v828_v61  ;;  %v836_v40 = vrot.slane %v829_v20, %v828_v61 }
 0x19c   : > { %842 = vst.msk [vmem:[%s176_s25] ss:$2 sm:$0x3] %vm840_vm13, %v836_v40  ;;  %v859_v22 = vrot.slane %v852_v15, %v828_v61 }
 0x19e   : > { %973 = vst.msk [vmem:[%s176_s25 + $0x1] ss:$2 sm:$0x3] %vm840_vm13, %v859_v22 }
 0x19f   : > { %1115 = shalt.err (!%p1112_p0)
}
 0x1a0   : > { %s1116_s22 = scalar_lea.hbm %s876_s3, 64  ;;  %s1120_s24 = scalar_lea.hbm %s1668_s2, 128 }
 0x1a1   : > { %p1117_p5 = scmp.ne.s32.totalorder %s876_s3, %s1116_s22  ;;  %p1121_p4 = scmp.lt.s32.totalorder %s876_s3, %s1668_s2 }
 0x1a2   : > { %p1122_p6 = scmp.lt.s32.totalorder %s1120_s24, %s1116_s22 }
 0x1a3   : > { %p1118_p9 = pnand %p1117_p5, %p1684_p11 }
 0x1a4   : > { %p1123_p8 = por %p1122_p6, %p1121_p4 }
 0x1a5   : > { %p1119_p1 = pneg %p1118_p9 }
 0x1a7   : > { %p1124_p3 = pnand %p1123_p8, %p1119_p1 }
 0x1a9   : > { %1127 = shalt.err (!%p1124_p3)
}
 0x1aa   : > { %987 = dma.vmem_to_hbm [thread:$0]  (%p1684_p11), %s879_s26, 64, %s876_s3, %s864_s4  }
 0x1ab PF: > { %s890_s8 = sand.u32 1, %s1158_s9   ;;  %p1685_p7 = scmp.ne.s32.totalorder %s1674_s16, 0 }
 0x1ac   : > { %p1686_p12 = scmp.ge.s32.totalorder %s1170_s12, 2  ;;  %s891_s18 = scalar_lea.sflag [#allocation5], %s890_s8 }
 0x1ae   : > { %p998_p10 = pnand %p1686_p12, %p1685_p7 }
 0x1b0   : > { %p999_p2 = pneg %p998_p10 }
 0x1b2   : > { %1153 = dma.done.wait (%p999_p2), %s891_s18, 64  }
 0x1b3   : > { %1155 = vsyncadd (%p999_p2), %s891_s18, 4294967232  ;;  %p16_p13 = scmp.ge.s32.totalorder %s1254_s21, 4   ;;  %s1687_s9 = smov %s1162_s10 }
 0x1b4   : > { %s1688_s10 = smov %s1166_s11  ;;  %s1689_s11 = smov %s1271_s29 }
 0x1b5   : > { %s1690_s12 = smov %s1254_s21  ;;  %18 = sbr.rel (!%p16_p13) target bundleno = 6 (0x6), region = 86 }
 0x1ba   :  { %896 = vsyncpa [#allocation4], 1 }
 0x1bb   :  { %898 = vsyncpa [#allocation4 + $0x1], 1 }
 0x1bc   :  { %899 = vsyncpa [#allocation7], 1 }
 0x1bd   :  { %900 = vsyncpa [#allocation5], 1 }
 0x1be   :  { %902 = vsyncpa [#allocation5 + $0x1], 1 }

</bundles_post_ra>
